<compile_context>
chip_gen: v7x
topology: tpu7x:2x2x1
jax: 0.10.0
libtpu: 0.0.40
codegen_flags: <defaults>
</compile_context>

<pallas_src>
import functools

import jax
import jax.numpy as jnp
from jax.experimental import pallas as pl
from jax.experimental.pallas import tpu as pltpu


# ---------------------------------------------------------------------------
# Fused Pallas kernel: policy MLP -> tanh action -> fused {Q1,Q2} MLP
# ---------------------------------------------------------------------------
def _context_iql_kernel(
    x_ref,                                   # (TB, OBS+CTX)
    pw1, pb1, pw2, pb2, pwmu, pbmu,          # policy params
    qw1x, qw1a, qb1, qw2, qb2, qw3, qb3,     # fused qf1+qf2 params
    act_ref,                                 # (TB, A)   action output
    q_ref,                                   # (TB, 2)   [q1, q2] output
):
    x = x_ref[...]

    def dot(a, b):
        return jnp.dot(a, b, preferred_element_type=jnp.float32)

    # ---- policy: 2-layer ReLU MLP + tanh mean head ----
    h = jnp.maximum(dot(x, pw1[...]) + pb1[...], 0.0)
    h = jnp.maximum(dot(h, pw2[...]) + pb2[...], 0.0)
    action = jnp.tanh(dot(h, pwmu[...]) + pbmu[...])          # (TB, A)

    # ---- fused Q networks (qf1 || qf2 via concatenated / block-diagonal weights) ----
    hq = jnp.maximum(dot(x, qw1x[...]) + dot(action, qw1a[...]) + qb1[...], 0.0)
    hq = jnp.maximum(dot(hq, qw2[...]) + qb2[...], 0.0)
    q = dot(hq, qw3[...]) + qb3[...]                           # (TB, 2) = [q1, q2]

    act_ref[...] = action.astype(act_ref.dtype)
    q_ref[...] = q.astype(q_ref.dtype)


# ---------------------------------------------------------------------------
# Parameter packing: raw per-network params -> fused kernel layout
# ---------------------------------------------------------------------------
def _pack_params(p, obs_dim, act_dim, ctx_dim):
    H = p["p_w2"].shape[0]
    fused = {
        "pw1": p["p_w1"], "pb1": p["p_b1"],
        "pw2": p["p_w2"], "pb2": p["p_b2"],
        "pwmu": p["p_wmu"], "pbmu": p["p_bmu"],
    }

    def split_q_w1(w):  # rows ordered [obs, action, ctx]
        return (w[:obs_dim], w[obs_dim:obs_dim + act_dim], w[obs_dim + act_dim:])

    o1, a1, c1 = split_q_w1(p["q1_w1"])
    o2, a2, c2 = split_q_w1(p["q2_w1"])
    # (OBS+CTX, 2H): rows ordered [obs, ctx] to match the wrapper's x = concat(obs, ctx)
    fused["qw1x"] = jnp.concatenate(
        [jnp.concatenate([o1, o2], axis=1), jnp.concatenate([c1, c2], axis=1)], axis=0)
    fused["qw1a"] = jnp.concatenate([a1, a2], axis=1)                          # (A, 2H)
    fused["qb1"] = jnp.concatenate([p["q1_b1"], p["q2_b1"]], axis=1)           # (1, 2H)

    z = jnp.zeros((H, H), jnp.float32)
    fused["qw2"] = jnp.block([[p["q1_w2"], z], [z, p["q2_w2"]]])               # (2H, 2H)
    fused["qb2"] = jnp.concatenate([p["q1_b2"], p["q2_b2"]], axis=1)           # (1, 2H)

    z1 = jnp.zeros((H, 1), jnp.float32)
    fused["qw3"] = jnp.block([[p["q1_w3"], z1], [z1, p["q2_w3"]]])             # (2H, 2)
    fused["qb3"] = jnp.concatenate([p["q1_b3"], p["q2_b3"]], axis=1)           # (1, 2)
    return fused


def _round_up(x, m):
    return ((x + m - 1) // m) * m


_WEIGHT_ORDER = ("pw1", "pb1", "pw2", "pb2", "pwmu", "pbmu",
                 "qw1x", "qw1a", "qb1", "qw2", "qb2", "qw3", "qb3")


def context_iql_forward(obs, ctx, params, *, max_batch_tile=512):
    """Forward pass of ContextIQL: returns (action, q1, q2)."""
    B, obs_dim = obs.shape
    ctx_dim = ctx.shape[1]
    act_dim = params["p_wmu"].shape[1]

    x = jnp.concatenate([obs, ctx], axis=-1).astype(jnp.float32)   # (B, OC)
    OC = obs_dim + ctx_dim

    fused = _pack_params(params, obs_dim, act_dim, ctx_dim)

    # batch tile: multiple of 8 sublanes, padded batch so the grid divides evenly
    TB = min(max_batch_tile, _round_up(B, 8))
    Bp = _round_up(B, TB)
    if Bp != B:
        x = jnp.pad(x, ((0, Bp - B), (0, 0)))

    row_map = lambda i: (i, 0)
    const_map = lambda i: (0, 0)

    in_specs = [pl.BlockSpec((TB, OC), row_map)] + [
        pl.BlockSpec(fused[name].shape, const_map) for name in _WEIGHT_ORDER
    ]

    action_p, q_p = pl.pallas_call(
        _context_iql_kernel,
        out_shape=(jax.ShapeDtypeStruct((Bp, act_dim), jnp.float32),
                   jax.ShapeDtypeStruct((Bp, 2), jnp.float32)),
        grid=(Bp // TB,),
        in_specs=in_specs,
        out_specs=(pl.BlockSpec((TB, act_dim), row_map),
                   pl.BlockSpec((TB, 2), row_map)),
        compiler_params=pltpu.CompilerParams(
            dimension_semantics=("parallel",)),
    )(x, *[fused[name] for name in _WEIGHT_ORDER])

    action = action_p[:B]
    q1 = q_p[:B, 0:1]
    q2 = q_p[:B, 1:2]
    return action, q1, q2


# ---------------------------------------------------------------------------
# Deterministic parameter construction (synthetic, no checkpoint loading)
# ---------------------------------------------------------------------------
def make_params(key, obs_dim, ctx_dim, act_dim, hidden):
    ks = iter(jax.random.split(key, 16))

    def lin(k, n_in, n_out):
        scale = 1.0 / jnp.sqrt(jnp.float32(n_in))
        return jax.random.uniform(k, (n_in, n_out), jnp.float32, -scale, scale)

    def bias(n_out):
        return jnp.zeros((1, n_out), jnp.float32)

    p = {}
    # policy: input = concat(obs, ctx)
    p["p_w1"] = lin(next(ks), obs_dim + ctx_dim, hidden); p["p_b1"] = bias(hidden)
    p["p_w2"] = lin(next(ks), hidden, hidden);            p["p_b2"] = bias(hidden)
    p["p_wmu"] = lin(next(ks), hidden, act_dim);          p["p_bmu"] = bias(act_dim)
    # qf1 / qf2: input = concat(obs, action, ctx)
    q_in = obs_dim + act_dim + ctx_dim
    for tag in ("q1", "q2"):
        p[f"{tag}_w1"] = lin(next(ks), q_in, hidden);  p[f"{tag}_b1"] = bias(hidden)
        p[f"{tag}_w2"] = lin(next(ks), hidden, hidden); p[f"{tag}_b2"] = bias(hidden)
        p[f"{tag}_w3"] = lin(next(ks), hidden, 1);      p[f"{tag}_b3"] = bias(1)
    return p


def reference_forward(obs, ctx, p):
    """Pure-JAX reference matching the PyTorch composition."""
    x = jnp.concatenate([obs, ctx], axis=-1)
    h = jax.nn.relu(x @ p["p_w1"] + p["p_b1"])
    h = jax.nn.relu(h @ p["p_w2"] + p["p_b2"])
    action = jnp.tanh(h @ p["p_wmu"] + p["p_bmu"])

    def q_net(tag):
        xi = jnp.concatenate([obs, action, ctx], axis=-1)
        hq = jax.nn.relu(xi @ p[f"{tag}_w1"] + p[f"{tag}_b1"])
        hq = jax.nn.relu(hq @ p[f"{tag}_w2"] + p[f"{tag}_b2"])
        return hq @ p[f"{tag}_w3"] + p[f"{tag}_b3"]

    return action, q_net("q1"), q_net("q2")


if __name__ == "__main__":
    B, OBS, CTX, ACT, HID = 2, 16, 8, 4, 32

    root = jax.random.PRNGKey(0)
    k_obs, k_ctx, k_par = jax.random.split(root, 3)
    obs = jax.random.normal(k_obs, (B, OBS), jnp.float32)
    ctx = jax.random.normal(k_ctx, (B, CTX), jnp.float32)
    params = make_params(k_par, OBS, CTX, ACT, HID)

    fwd = jax.jit(functools.partial(context_iql_forward))
    action, q1, q2 = fwd(obs, ctx, params)
    jax.block_until_ready((action, q1, q2))

    assert action.shape == (B, ACT) and q1.shape == (B, 1) and q2.shape == (B, 1)

    a_ref, q1_ref, q2_ref = reference_forward(obs, ctx, params)
    assert jnp.allclose(action, a_ref, atol=1e-2, rtol=1e-2)
    assert jnp.allclose(q1, q1_ref, atol=1e-2, rtol=1e-2)
    assert jnp.allclose(q2, q2_ref, atol=1e-2, rtol=1e-2)

    print("KERNEL_OK")
</pallas_src>

<mosaic_0001>
module attributes {stable_mosaic.version = 11 : i64} {
  func.func @_context_iql_kernel(%arg0: i32, %arg1: memref<8x24xf32, #tpu.memory_space<vmem>>, %arg2: memref<24x32xf32, #tpu.memory_space<vmem>>, %arg3: memref<1x32xf32, #tpu.memory_space<vmem>>, %arg4: memref<32x32xf32, #tpu.memory_space<vmem>>, %arg5: memref<1x32xf32, #tpu.memory_space<vmem>>, %arg6: memref<32x4xf32, #tpu.memory_space<vmem>>, %arg7: memref<1x4xf32, #tpu.memory_space<vmem>>, %arg8: memref<24x64xf32, #tpu.memory_space<vmem>>, %arg9: memref<4x64xf32, #tpu.memory_space<vmem>>, %arg10: memref<1x64xf32, #tpu.memory_space<vmem>>, %arg11: memref<64x64xf32, #tpu.memory_space<vmem>>, %arg12: memref<1x64xf32, #tpu.memory_space<vmem>>, %arg13: memref<64x2xf32, #tpu.memory_space<vmem>>, %arg14: memref<1x2xf32, #tpu.memory_space<vmem>>, %arg15: memref<8x4xf32, #tpu.memory_space<vmem>>, %arg16: memref<8x2xf32, #tpu.memory_space<vmem>>) attributes {dimension_semantics = [#tpu.dimension_semantics<parallel>], iteration_bounds = array<i64: 1>, scalar_prefetch = 0 : i64, scratch_operands = 0 : i64, tpu.core_type = #tpu.core_type<tc>, window_params = [{transform_indices = @transform_0, window_bounds = array<i64: 8, 24>}, {pipeline_mode = #tpu.pipeline_mode<synchronous>, transform_indices = @transform_1, window_bounds = array<i64: 24, 32>}, {pipeline_mode = #tpu.pipeline_mode<synchronous>, transform_indices = @transform_2, window_bounds = array<i64: 1, 32>}, {pipeline_mode = #tpu.pipeline_mode<synchronous>, transform_indices = @transform_3, window_bounds = array<i64: 32, 32>}, {pipeline_mode = #tpu.pipeline_mode<synchronous>, transform_indices = @transform_4, window_bounds = array<i64: 1, 32>}, {pipeline_mode = #tpu.pipeline_mode<synchronous>, transform_indices = @transform_5, window_bounds = array<i64: 32, 4>}, {pipeline_mode = #tpu.pipeline_mode<synchronous>, transform_indices = @transform_6, window_bounds = array<i64: 1, 4>}, {pipeline_mode = #tpu.pipeline_mode<synchronous>, transform_indices = @transform_7, window_bounds = array<i64: 24, 64>}, {pipeline_mode = #tpu.pipeline_mode<synchronous>, transform_indices = @transform_8, window_bounds = array<i64: 4, 64>}, {pipeline_mode = #tpu.pipeline_mode<synchronous>, transform_indices = @transform_9, window_bounds = array<i64: 1, 64>}, {pipeline_mode = #tpu.pipeline_mode<synchronous>, transform_indices = @transform_10, window_bounds = array<i64: 64, 64>}, {pipeline_mode = #tpu.pipeline_mode<synchronous>, transform_indices = @transform_11, window_bounds = array<i64: 1, 64>}, {pipeline_mode = #tpu.pipeline_mode<synchronous>, transform_indices = @transform_12, window_bounds = array<i64: 64, 2>}, {pipeline_mode = #tpu.pipeline_mode<synchronous>, transform_indices = @transform_13, window_bounds = array<i64: 1, 2>}, {transform_indices = @transform_14, window_bounds = array<i64: 8, 4>}, {transform_indices = @transform_15, window_bounds = array<i64: 8, 2>}]} {
    %c0 = arith.constant 0 : index
    %c0_0 = arith.constant 0 : index
    %0 = vector.load %arg1[%c0, %c0_0] : memref<8x24xf32, #tpu.memory_space<vmem>>, vector<8x24xf32>
    %c0_1 = arith.constant 0 : index
    %c0_2 = arith.constant 0 : index
    %1 = vector.load %arg2[%c0_1, %c0_2] : memref<24x32xf32, #tpu.memory_space<vmem>>, vector<24x32xf32>
    %cst = arith.constant dense<0.000000e+00> : vector<8x32xf32>
    %2 = tpu.matmul %0, %1, %cst {dimension_numbers = #tpu.dot_dimension_numbers<[1], [0], [0], [1], [0, 0, 1, 1], [], []>} : vector<8x24xf32>, vector<24x32xf32>, vector<8x32xf32> -> vector<8x32xf32>
    %c0_3 = arith.constant 0 : index
    %c0_4 = arith.constant 0 : index
    %3 = vector.load %arg3[%c0_3, %c0_4] : memref<1x32xf32, #tpu.memory_space<vmem>>, vector<1x32xf32>
    %4 = vector.broadcast %3 : vector<1x32xf32> to vector<8x32xf32>
    %5 = arith.addf %2, %4 : vector<8x32xf32>
    %cst_5 = arith.constant 0.000000e+00 : f32
    %6 = vector.broadcast %cst_5 : f32 to vector<8x32xf32>
    %7 = arith.maximumf %5, %6 : vector<8x32xf32>
    %c0_6 = arith.constant 0 : index
    %c0_7 = arith.constant 0 : index
    %8 = vector.load %arg4[%c0_6, %c0_7] : memref<32x32xf32, #tpu.memory_space<vmem>>, vector<32x32xf32>
    %cst_8 = arith.constant dense<0.000000e+00> : vector<8x32xf32>
    %9 = tpu.matmul %7, %8, %cst_8 {dimension_numbers = #tpu.dot_dimension_numbers<[1], [0], [0], [1], [0, 0, 1, 1], [], []>} : vector<8x32xf32>, vector<32x32xf32>, vector<8x32xf32> -> vector<8x32xf32>
    %c0_9 = arith.constant 0 : index
    %c0_10 = arith.constant 0 : index
    %10 = vector.load %arg5[%c0_9, %c0_10] : memref<1x32xf32, #tpu.memory_space<vmem>>, vector<1x32xf32>
    %11 = vector.broadcast %10 : vector<1x32xf32> to vector<8x32xf32>
    %12 = arith.addf %9, %11 : vector<8x32xf32>
    %cst_11 = arith.constant 0.000000e+00 : f32
    %13 = vector.broadcast %cst_11 : f32 to vector<8x32xf32>
    %14 = arith.maximumf %12, %13 : vector<8x32xf32>
    %c0_12 = arith.constant 0 : index
    %c0_13 = arith.constant 0 : index
    %15 = vector.load %arg6[%c0_12, %c0_13] : memref<32x4xf32, #tpu.memory_space<vmem>>, vector<32x4xf32>
    %cst_14 = arith.constant dense<0.000000e+00> : vector<8x4xf32>
    %16 = tpu.matmul %14, %15, %cst_14 {dimension_numbers = #tpu.dot_dimension_numbers<[1], [0], [0], [1], [0, 0, 1, 1], [], []>} : vector<8x32xf32>, vector<32x4xf32>, vector<8x4xf32> -> vector<8x4xf32>
    %c0_15 = arith.constant 0 : index
    %c0_16 = arith.constant 0 : index
    %17 = vector.load %arg7[%c0_15, %c0_16] : memref<1x4xf32, #tpu.memory_space<vmem>>, vector<1x4xf32>
    %18 = vector.broadcast %17 : vector<1x4xf32> to vector<8x4xf32>
    %19 = arith.addf %16, %18 : vector<8x4xf32>
    %20 = math.tanh %19 : vector<8x4xf32>
    %c0_17 = arith.constant 0 : index
    %c0_18 = arith.constant 0 : index
    %21 = vector.load %arg8[%c0_17, %c0_18] : memref<24x64xf32, #tpu.memory_space<vmem>>, vector<24x64xf32>
    %cst_19 = arith.constant dense<0.000000e+00> : vector<8x64xf32>
    %22 = tpu.matmul %0, %21, %cst_19 {dimension_numbers = #tpu.dot_dimension_numbers<[1], [0], [0], [1], [0, 0, 1, 1], [], []>} : vector<8x24xf32>, vector<24x64xf32>, vector<8x64xf32> -> vector<8x64xf32>
    %c0_20 = arith.constant 0 : index
    %c0_21 = arith.constant 0 : index
    %23 = vector.load %arg9[%c0_20, %c0_21] : memref<4x64xf32, #tpu.memory_space<vmem>>, vector<4x64xf32>
    %cst_22 = arith.constant dense<0.000000e+00> : vector<8x64xf32>
    %24 = tpu.matmul %20, %23, %cst_22 {dimension_numbers = #tpu.dot_dimension_numbers<[1], [0], [0], [1], [0, 0, 1, 1], [], []>} : vector<8x4xf32>, vector<4x64xf32>, vector<8x64xf32> -> vector<8x64xf32>
    %25 = arith.addf %22, %24 : vector<8x64xf32>
    %c0_23 = arith.constant 0 : index
    %c0_24 = arith.constant 0 : index
    %26 = vector.load %arg10[%c0_23, %c0_24] : memref<1x64xf32, #tpu.memory_space<vmem>>, vector<1x64xf32>
    %27 = vector.broadcast %26 : vector<1x64xf32> to vector<8x64xf32>
    %28 = arith.addf %25, %27 : vector<8x64xf32>
    %cst_25 = arith.constant 0.000000e+00 : f32
    %29 = vector.broadcast %cst_25 : f32 to vector<8x64xf32>
    %30 = arith.maximumf %28, %29 : vector<8x64xf32>
    %c0_26 = arith.constant 0 : index
    %c0_27 = arith.constant 0 : index
    %31 = vector.load %arg11[%c0_26, %c0_27] : memref<64x64xf32, #tpu.memory_space<vmem>>, vector<64x64xf32>
    %cst_28 = arith.constant dense<0.000000e+00> : vector<8x64xf32>
    %32 = tpu.matmul %30, %31, %cst_28 {dimension_numbers = #tpu.dot_dimension_numbers<[1], [0], [0], [1], [0, 0, 1, 1], [], []>} : vector<8x64xf32>, vector<64x64xf32>, vector<8x64xf32> -> vector<8x64xf32>
    %c0_29 = arith.constant 0 : index
    %c0_30 = arith.constant 0 : index
    %33 = vector.load %arg12[%c0_29, %c0_30] : memref<1x64xf32, #tpu.memory_space<vmem>>, vector<1x64xf32>
    %34 = vector.broadcast %33 : vector<1x64xf32> to vector<8x64xf32>
    %35 = arith.addf %32, %34 : vector<8x64xf32>
    %cst_31 = arith.constant 0.000000e+00 : f32
    %36 = vector.broadcast %cst_31 : f32 to vector<8x64xf32>
    %37 = arith.maximumf %35, %36 : vector<8x64xf32>
    %c0_32 = arith.constant 0 : index
    %c0_33 = arith.constant 0 : index
    %38 = vector.load %arg13[%c0_32, %c0_33] : memref<64x2xf32, #tpu.memory_space<vmem>>, vector<64x2xf32>
    %cst_34 = arith.constant dense<0.000000e+00> : vector<8x2xf32>
    %39 = tpu.matmul %37, %38, %cst_34 {dimension_numbers = #tpu.dot_dimension_numbers<[1], [0], [0], [1], [0, 0, 1, 1], [], []>} : vector<8x64xf32>, vector<64x2xf32>, vector<8x2xf32> -> vector<8x2xf32>
    %c0_35 = arith.constant 0 : index
    %c0_36 = arith.constant 0 : index
    %40 = vector.load %arg14[%c0_35, %c0_36] : memref<1x2xf32, #tpu.memory_space<vmem>>, vector<1x2xf32>
    %41 = vector.broadcast %40 : vector<1x2xf32> to vector<8x2xf32>
    %42 = arith.addf %39, %41 : vector<8x2xf32>
    %c0_37 = arith.constant 0 : index
    %c0_38 = arith.constant 0 : index
    %43 = vector.load %arg15[%c0_37, %c0_38] : memref<8x4xf32, #tpu.memory_space<vmem>>, vector<8x4xf32>
    tpu.vector_store %arg15[%c0_37, %c0_38], %20 {strides = array<i32>} : memref<8x4xf32, #tpu.memory_space<vmem>>, vector<8x4xf32>,
    %c0_39 = arith.constant 0 : index
    %c0_40 = arith.constant 0 : index
    %44 = vector.load %arg16[%c0_39, %c0_40] : memref<8x2xf32, #tpu.memory_space<vmem>>, vector<8x2xf32>
    tpu.vector_store %arg16[%c0_39, %c0_40], %42 {strides = array<i32>} : memref<8x2xf32, #tpu.memory_space<vmem>>, vector<8x2xf32>,
    return
  }
  func.func @transform_0(%arg0: i32) -> (i32, i32) {
    %c0_i32 = arith.constant 0 : i32
    %c0_i32_0 = arith.constant 0 : i32
    return %arg0, %c0_i32 : i32, i32
  }
  func.func @transform_1(%arg0: i32) -> (i32, i32) {
    %c0_i32 = arith.constant 0 : i32
    %c0_i32_0 = arith.constant 0 : i32
    %c0_i32_1 = arith.constant 0 : i32
    return %c0_i32, %c0_i32_0 : i32, i32
  }
  func.func @transform_2(%arg0: i32) -> (i32, i32) {
    %c0_i32 = arith.constant 0 : i32
    %c0_i32_0 = arith.constant 0 : i32
    %c0_i32_1 = arith.constant 0 : i32
    return %c0_i32, %c0_i32_0 : i32, i32
  }
  func.func @transform_3(%arg0: i32) -> (i32, i32) {
    %c0_i32 = arith.constant 0 : i32
    %c0_i32_0 = arith.constant 0 : i32
    %c0_i32_1 = arith.constant 0 : i32
    return %c0_i32, %c0_i32_0 : i32, i32
  }
  func.func @transform_4(%arg0: i32) -> (i32, i32) {
    %c0_i32 = arith.constant 0 : i32
    %c0_i32_0 = arith.constant 0 : i32
    %c0_i32_1 = arith.constant 0 : i32
    return %c0_i32, %c0_i32_0 : i32, i32
  }
  func.func @transform_5(%arg0: i32) -> (i32, i32) {
    %c0_i32 = arith.constant 0 : i32
    %c0_i32_0 = arith.constant 0 : i32
    %c0_i32_1 = arith.constant 0 : i32
    return %c0_i32, %c0_i32_0 : i32, i32
  }
  func.func @transform_6(%arg0: i32) -> (i32, i32) {
    %c0_i32 = arith.constant 0 : i32
    %c0_i32_0 = arith.constant 0 : i32
    %c0_i32_1 = arith.constant 0 : i32
    return %c0_i32, %c0_i32_0 : i32, i32
  }
  func.func @transform_7(%arg0: i32) -> (i32, i32) {
    %c0_i32 = arith.constant 0 : i32
    %c0_i32_0 = arith.constant 0 : i32
    %c0_i32_1 = arith.constant 0 : i32
    return %c0_i32, %c0_i32_0 : i32, i32
  }
  func.func @transform_8(%arg0: i32) -> (i32, i32) {
    %c0_i32 = arith.constant 0 : i32
    %c0_i32_0 = arith.constant 0 : i32
    %c0_i32_1 = arith.constant 0 : i32
    return %c0_i32, %c0_i32_0 : i32, i32
  }
  func.func @transform_9(%arg0: i32) -> (i32, i32) {
    %c0_i32 = arith.constant 0 : i32
    %c0_i32_0 = arith.constant 0 : i32
    %c0_i32_1 = arith.constant 0 : i32
    return %c0_i32, %c0_i32_0 : i32, i32
  }
  func.func @transform_10(%arg0: i32) -> (i32, i32) {
    %c0_i32 = arith.constant 0 : i32
    %c0_i32_0 = arith.constant 0 : i32
    %c0_i32_1 = arith.constant 0 : i32
    return %c0_i32, %c0_i32_0 : i32, i32
  }
  func.func @transform_11(%arg0: i32) -> (i32, i32) {
    %c0_i32 = arith.constant 0 : i32
    %c0_i32_0 = arith.constant 0 : i32
    %c0_i32_1 = arith.constant 0 : i32
    return %c0_i32, %c0_i32_0 : i32, i32
  }
  func.func @transform_12(%arg0: i32) -> (i32, i32) {
    %c0_i32 = arith.constant 0 : i32
    %c0_i32_0 = arith.constant 0 : i32
    %c0_i32_1 = arith.constant 0 : i32
    return %c0_i32, %c0_i32_0 : i32, i32
  }
  func.func @transform_13(%arg0: i32) -> (i32, i32) {
    %c0_i32 = arith.constant 0 : i32
    %c0_i32_0 = arith.constant 0 : i32
    %c0_i32_1 = arith.constant 0 : i32
    return %c0_i32, %c0_i32_0 : i32, i32
  }
  func.func @transform_14(%arg0: i32) -> (i32, i32) {
    %c0_i32 = arith.constant 0 : i32
    %c0_i32_0 = arith.constant 0 : i32
    return %arg0, %c0_i32 : i32, i32
  }
  func.func @transform_15(%arg0: i32) -> (i32, i32) {
    %c0_i32 = arith.constant 0 : i32
    %c0_i32_0 = arith.constant 0 : i32
    return %arg0, %c0_i32 : i32, i32
  }
}

</mosaic_0001>

<bundles_post_ra>
// kernel: context_iql_forward.1
= control target key start
LH: loop header
LB: loop body
LE: loop exit
PB: predicated region body
PF: predicated region fallthrough
CT: control target
= control target key end

     0   :  { %v838_v0 = vmov 0.0|0.0   ;;  %vm839_vm0 = vmmov 0   ;;  %v840_v3 = vmov 0.0   ;;  %vm60_vm1 = vcmask 195584   ;;  %s1078_s1 = inlined_call_operand.vmem [shape: f32[24,32], index: 1, kind: input, shape index: {}]   ;;  %s1079_s3 = inlined_call_operand.vmem [shape: f32[32,32], index: 3, kind: input, shape index: {}]   ;;  %s1080_s0 = inlined_call_operand.vmem [shape: f32[8,24], index: 0, kind: input, shape index: {}]   ;;  %s1081_s5 = inlined_call_operand.vmem [shape: f32[32,4], index: 5, kind: input, shape index: {}]   ;;  %s1082_s2 = inlined_call_operand.vmem [shape: f32[1,32], index: 2, kind: input, shape index: {}]   ;;  %s1083_s4 = inlined_call_operand.vmem [shape: f32[1,32], index: 4, kind: input, shape index: {}]   ;;  %s1084_s8 = inlined_call_operand.vmem [shape: f32[4,64], index: 8, kind: input, shape index: {}]   ;;  %s1085_s10 = inlined_call_operand.vmem [shape: f32[64,64], index: 10, kind: input, shape index: {}]   ;;  %s1086_s6 = inlined_call_operand.vmem [shape: f32[1,4], index: 6, kind: input, shape index: {}]   ;;  %s1087_s7 = inlined_call_operand.vmem [shape: f32[24,64], index: 7, kind: input, shape index: {}]   ;;  %s1088_s14 = inlined_call_operand.vmem [shape: f32[8,4], index: 14, kind: output, shape index: {0}]   ;;  %s1089_s12 = inlined_call_operand.vmem [shape: f32[64,2], index: 12, kind: input, shape index: {}]   ;;  %s1090_s9 = inlined_call_operand.vmem [shape: f32[1,64], index: 9, kind: input, shape index: {}]   ;;  %s1091_s11 = inlined_call_operand.vmem [shape: f32[1,64], index: 11, kind: input, shape index: {}]   ;;  %s1092_s13 = inlined_call_operand.vmem [shape: f32[1,2], index: 13, kind: input, shape index: {}]   ;;  %s1093_s15 = inlined_call_operand.vmem [shape: f32[8,2], index: 15, kind: output, shape index: {1}]  }
   0x1   :  { %791 = vmatprep.subr.bf16.mxu0 %v838_v0  ;;  %v50_v1 = vld [vmem:[%s1078_s1] sm:$0xff]  ;;  %v51_v2 = vld [vmem:[%s1078_s1 + $0x8] sm:$0xff]  ;;  %714 = vmatprep.mubr.msk.f32.mxu0 %vm839_vm0, %v840_v3  ;;  %v52_v8 = vld [vmem:[%s1078_s1 + $0x10] sm:$0xff]  ;;  %vm146_vm2 = vcmask 261120   ;;  %vm314_vm3 = vcmask 1043456   ;;  %vm310_vm4 = vcmask 31744  }
   0x2   :  { %v792_v4 = vpack.c.bf16 %v51_v2, %v50_v1  ;;  %794 = vmatprep.subr.bf16.mxu1 %v838_v0  ;;  %v135_v5 = vld [vmem:[%s1079_s3] sm:$0xff]  ;;  %v136_v6 = vld [vmem:[%s1079_s3 + $0x8] sm:$0xff]  ;;  %725 = vmatprep.mubr.msk.f32.mxu1 %vm839_vm0, %v840_v3  ;;  %v137_v10 = vld [vmem:[%s1079_s3 + $0x10] sm:$0xff]  ;;  %vm482_vm5 = vcmask 523264   ;;  %vm646_vm6 = vcmask 15360  }
   0x3   :  { %v795_v7 = vpack.c.bf16 %v136_v6, %v135_v5  ;;  %v946_v9 = vld [vmem:[%s1080_s0] sm:$0xff]  ;;  %v138_v11 = vld [vmem:[%s1079_s3 + $0x18] sm:$0xff]  ;;  %v222_v14 = vld [vmem:[%s1081_s5 + $0x8] sm:$0xff] }
   0x4   :  { %793 = vmatpush3.bf16.msra.mxu0 %v792_v4  ;;  %v798_v12 = vpack.c.bf16 %v138_v11, %v137_v10  ;;  %v221_v13 = vld [vmem:[%s1081_s5] sm:$0xff]  ;;  %v223_v21 = vld [vmem:[%s1081_s5 + $0x10] sm:$0xff]  ;;  %v224_v22 = vld [vmem:[%s1081_s5 + $0x18] sm:$0xff] }
   0x5   :  { %712 = vmatprep.subr.mxu0 %v840_v3  ;;  %796 = vmatpush3.bf16.msra.mxu1 %v795_v7  ;;  %v801_v15 = vpack.c.bf16 %v222_v14, %v221_v13  ;;  %v656_v16 = vld [vmem:[%s1082_s2] ss:$0 sm:$0xff]  ;;  %v804_v23 = vpack.c.bf16 %v224_v22, %v223_v21  ;;  %v468_v31 = vld [vmem:[%s1085_s10 + $0x8] sm:$0xff]  ;;  %v308_v41 = vld [vmem:[%s1087_s7 + $0x10] sm:$0xff] }
   0x6   :  { %797 = vmatprep.subr.bf16.mxu1 %v838_v0  ;;  %v658_v24 = vld [vmem:[%s1083_s4] ss:$0 sm:$0xff]  ;;  %v307_v38 = vld [vmem:[%s1087_s7 + $0x8] sm:$0xff]  ;;  %v469_v42 = vld [vmem:[%s1085_s10 + $0x10] sm:$0xff] }
   0x7   :  { %v309_v29 = vld [vmem:[%s1084_s8] sm:$0xf]  ;;  %v470_v43 = vld [vmem:[%s1085_s10 + $0x18] sm:$0xff]  ;;  %v472_v46 = vld [vmem:[%s1085_s10 + $0x28] sm:$0xff] }
   0x8   :  { %713 = vmatpush3.msra.mxu0 %v52_v8  ;;  %v467_v30 = vld [vmem:[%s1085_s10] sm:$0xff]  ;;  %v813_v44 = vpack.c.bf16 %v470_v43, %v469_v42  ;;  %v473_v48 = vld [vmem:[%s1085_s10 + $0x30] sm:$0xff]  ;;  %v474_v49 = vld [vmem:[%s1085_s10 + $0x38] sm:$0xff] }
   0x9   :  { %715 = vmatmul.mubr.msk.f32.vlgmr.msra.gmra.mrb[0].mxu0 %vm60_vm1, %v946_v9  ;;  %800 = vmatprep.subr.bf16.mxu0 %v838_v0  ;;  %v810_v32 = vpack.c.bf16 %v468_v31, %v467_v30  ;;  %v660_v33 = vld [vmem:[%s1086_s6] ss:$0 sm:$0xff]  ;;  %v819_v50 = vpack.c.bf16 %v474_v49, %v473_v48  ;;  %v558_v52 = vld [vmem:[%s1089_s12 + $0x8] sm:$0xff]  ;;  %v559_v53 = vld [vmem:[%s1089_s12 + $0x10] sm:$0xff] }
   0xa   :  { %736 = vmatprep.mubr.msk.f32.mxu0 %vm839_vm0, %v840_v3  ;;  %799 = vmatpush3.bf16.msra.mxu1 %v798_v12  ;;  %v306_v37 = vld [vmem:[%s1087_s7] sm:$0xff]  ;;  %v560_v55 = vld [vmem:[%s1089_s12 + $0x18] sm:$0xff]  ;;  %v562_v58 = vld [vmem:[%s1089_s12 + $0x28] sm:$0xff] }
   0xb   :  { %739 = vmatprep.subr.mxu1 %v840_v3  ;;  %802 = vmatpush3.bf16.msra.mxu0 %v801_v15  ;;  %v807_v39 = vpack.c.bf16 %v307_v38, %v306_v37  ;;  %v471_v45 = vld [vmem:[%s1085_s10 + $0x20] sm:$0xff]  ;;  %v825_v56 = vpack.c.bf16 %v560_v55, %v559_v53  ;;  %v563_v5 = vld [vmem:[%s1089_s12 + $0x30] sm:$0xff] }
   0xc   :  { %803 = vmatprep.subr.bf16.mxu0 %v838_v0  ;;  %v816_v47 = vpack.c.bf16 %v472_v46, %v471_v45  ;;  %v557_v51 = vld [vmem:[%s1089_s12] sm:$0xff] }
   0xd   :  { %v822_v54 = vpack.c.bf16 %v558_v52, %v557_v51  ;;  %v561_v57 = vld [vmem:[%s1089_s12 + $0x20] sm:$0xff] }
   0xe   :  { %v828_v59 = vpack.c.bf16 %v562_v58, %v561_v57  ;;  %v665_v63 = vld [vmem:[%s1090_s9] ss:$0 sm:$0xff] }
   0xf   :  { %805 = vmatpush3.bf16.msra.mxu0 %v804_v23  ;;  %v666_v7 = vld [vmem:[%s1091_s11] ss:$0 sm:$0xff] }
  0x10   :  { %809 = vmatprep.subr.bf16.mxu0 %v838_v0  ;;  %v668_v12 = vld [vmem:[%s1092_s13] ss:$0 sm:$0xff] }
  0xdc   :  { %v130_v17 = vpop.f32.mrb[0].mxu0 }
  0xdd   :  { %v131_v18 = vadd.f32 %v656_v16, %v130_v17  ;;  %v716_v19 = vpop.f32.mrb[1].mxu0 }
  0xdf   :  { %v134_v20 = vmax.f32 %v131_v18, 0.0 }
  0xe1   :  { %726 = vmatmul.mubr.msk.f32.vlgmr.msra.gmra.mrb[0].mxu1 %vm146_vm2, %v134_v20 }
  0xe2   :  { %741 = vmatprep.mubr.msk.f32.mxu1 %vm839_vm0, %v840_v3  ;;  %740 = vmatpush3.msk.msra.mxu1 %vm314_vm3, %v309_v29 }
  0xe3   :  { %806 = vmatprep.subr.bf16.mxu1 %v838_v0 }
 0x1b4   :  { %v216_v25 = vpop.f32.mrb[0].mxu1 }
 0x1b5   :  { %v217_v26 = vadd.f32 %v658_v24, %v216_v25  ;;  %v727_v27 = vpop.f32.mrb[1].mxu1 }
 0x1b7   :  { %v220_v28 = vmax.f32 %v217_v26, 0.0 }
 0x1b9   :  { %737 = vmatmul.mubr.msk.f32.vlgmr.msra.gmra.mrb[2].mxu0 %vm146_vm2, %v220_v28 }
 0x1ba   :  { %769 = vmatprep.mubr.msk.f32.mxu0 %vm839_vm0, %v840_v3  ;;  %811 = vmatpush3.bf16.msra.mxu0 %v810_v32 }
 0x1bb   :  { %812 = vmatprep.subr.bf16.mxu0 %v838_v0 }
 0x1be   :  { %814 = vmatpush3.bf16.msra.mxu0 %v813_v44 }
 0x1bf   :  { %815 = vmatprep.subr.bf16.mxu0 %v838_v0 }
 0x1c2   :  { %817 = vmatpush3.bf16.msra.mxu0 %v816_v47 }
 0x1c3   :  { %818 = vmatprep.subr.bf16.mxu0 %v838_v0 }
 0x1c6   :  { %820 = vmatpush3.bf16.msra.mxu0 %v819_v50 }
 0x28c   :  { %v301_v34 = vpop.f32.mrb[2].mxu0 }
 0x28d   :  { %v302_v35 = vadd.f32 %v660_v33, %v301_v34  ;;  %v738_v36 = vpop.f32.mrb[3].mxu0 }
 0x28f   :  { %836 = vtanh.f32 %v302_v35 }
 0x299   :  { %v837_v40 = vpop.eup %836 }
 0x29a   :  { %742 = vmatmul.mubr.msk.f32.vlgmr.msra.gmra.mrb[2].mxu1 %vm310_vm4, %v837_v40  ;;  %645 = vst.msk [vmem:[%s1088_s14] sm:$0xff] %vm310_vm4, %v837_v40 }
 0x29b   :  { %808 = vmatpush3.bf16.msra.mxu1 %v807_v39  ;;  %750 = vmatprep.mubr.msk.f32.mxu1 %vm839_vm0, %v840_v3 }
 0x29c   :  { %748 = vmatprep.subr.mxu1 %v840_v3 }
 0x29f   :  { %749 = vmatpush3.msra.mxu1 %v308_v41 }
 0x2a0   :  { %751 = vmatmul.mubr.msk.f32.vlgmr.msra.gmra.mrb[4].mxu1 %vm60_vm1, %v946_v9  ;;  %821 = vmatprep.subr.bf16.mxu1 %v838_v0 }
 0x2a1   :  { %788 = vmatprep.mubr.msk.f32.mxu1 %vm839_vm0, %v840_v3  ;;  %823 = vmatpush3.bf16.msra.mxu1 %v822_v54 }
 0x2a2   :  { %824 = vmatprep.subr.bf16.mxu1 %v838_v0 }
 0x2a5   :  { %826 = vmatpush3.bf16.msra.mxu1 %v825_v56 }
 0x2a6   :  { %827 = vmatprep.subr.bf16.mxu1 %v838_v0 }
 0x2a9   :  { %829 = vmatpush3.bf16.msra.mxu1 %v828_v59 }
 0x2aa   :  { %830 = vmatprep.subr.bf16.mxu1 %v838_v0  ;;  %v564_v0 = vld [vmem:[%s1089_s12 + $0x38] sm:$0xff] }
 0x2ab   :  { %v831_v6 = vpack.c.bf16 %v564_v0, %v563_v5 }
 0x2ad   :  { %832 = vmatpush3.bf16.msra.mxu1 %v831_v6 }
 0x36d   :  { %v384_v60 = vpop.f32.mrb[2].mxu1 }
 0x36e   :  { %v743_v61 = vpop.f32.mrb[3].mxu1 }
 0x373   :  { %v454_v62 = vpop.f32.mrb[4].mxu1 }
 0x374   :  { %v455_v1 = vadd.f32 %v454_v62, %v384_v60  ;;  %v752_v2 = vpop.f32.mrb[5].mxu1 }
 0x376   :  { %v465_v3 = vadd.f32 %v665_v63, %v455_v1 }
 0x378   :  { %v466_v4 = vmax.f32 %v465_v3, 0.0 }
 0x37a   :  { %770 = vmatmul.mubr.msk.f32.vlgmr.msra.gmra.mrb[4].mxu0 %vm482_vm5, %v466_v4 }
 0x44d   :  { %v552_v8 = vpop.f32.mrb[4].mxu0 }
 0x44e   :  { %v553_v9 = vadd.f32 %v666_v7, %v552_v8  ;;  %v771_v10 = vpop.f32.mrb[5].mxu0 }
 0x450   :  { %v556_v11 = vmax.f32 %v553_v9, 0.0 }
 0x452   :  { %789 = vmatmul.mubr.msk.f32.vlgmr.msra.gmra.mrb[6].mxu1 %vm482_vm5, %v556_v11 }
 0x525   :  { %v641_v13 = vpop.f32.mrb[6].mxu1 }
 0x526   :  { %v642_v14 = vadd.f32 %v668_v12, %v641_v13  ;;  %v790_v15 = vpop.f32.mrb[7].mxu1 }
 0x528   :  { %647 = vst.msk [vmem:[%s1093_s15] sm:$0xff] %vm646_vm6, %v642_v14 }

</bundles_post_ra>
